<compile_context>
chip_gen: v6e
topology: v6e:2x2x1
jax: 0.10.0
libtpu: 0.0.40
codegen_flags: <defaults>
</compile_context>

<pallas_src>
import functools

import jax
import jax.numpy as jnp
from jax.experimental import pallas as pl
from jax.experimental.pallas import tpu as pltpu


# ----------------------------- Pallas kernels ------------------------------ #

def _conv_bias_stats_kernel(a_ref, w_ref, b_ref, conv_ref, sum_ref, ssq_ref,
                            *, m_real):
    """A_tile @ W + bias, plus per-tile channel sum / sum-of-squares.

    a_ref: (tm, Kpad)  w_ref: (Kpad, Cpad)  b_ref: (1, Cpad)
    conv_ref: (tm, Cpad)  sum_ref / ssq_ref: (1, 1, Cpad)
    """
    acc = jnp.dot(a_ref[...], w_ref[...], preferred_element_type=jnp.float32)
    acc = acc + b_ref[...]
    conv_ref[...] = acc.astype(conv_ref.dtype)

    tm = acc.shape[0]
    if m_real % tm != 0:
        # Rows beyond the real M are zero-padded im2col rows whose conv value
        # equals the bias; mask them out of the batch statistics.
        row = (jax.lax.broadcasted_iota(jnp.int32, acc.shape, 0)
               + pl.program_id(0) * tm)
        valid = (row < m_real).astype(acc.dtype)
        masked = acc * valid
        sum_ref[...] = jnp.sum(masked, axis=0)[None, None, :]
        ssq_ref[...] = jnp.sum(masked * acc, axis=0)[None, None, :]
    else:
        sum_ref[...] = jnp.sum(acc, axis=0)[None, None, :]
        ssq_ref[...] = jnp.sum(acc * acc, axis=0)[None, None, :]


def _bn_relu_kernel(y_ref, scale_ref, shift_ref, o_ref):
    # y_ref: (tm, Cpad)   scale/shift: (1, Cpad)   o_ref: (tm, Cpad)
    z = y_ref[...] * scale_ref[...] + shift_ref[...]
    o_ref[...] = jnp.maximum(z, 0.0).astype(o_ref.dtype)


# ------------------------------ tiling helpers ------------------------------ #

def _round_up(x, m):
    return (x + m - 1) // m * m


def _choose_tile_m(m, k_pad, c_pad, in_itemsize,
                   vmem_budget=24 * 1024 * 1024, min_grid=4):
    """Row tile: as large as possible (<=512 rows) while
       (a) the double-buffered working set stays well inside scoped VMEM
           (v7x has only 64 MiB physical / 32 MiB default scoped), and
       (b) the grid keeps >= min_grid steps so the 'parallel' row axis can be
           sharded across both v7x TensorCores and stays pipelined."""
    def working_set(t):
        return 2 * (t * k_pad * in_itemsize        # A tile (double buffered)
                    + k_pad * c_pad * in_itemsize  # W tile
                    + (t * c_pad + 2 * c_pad) * 4)  # f32 conv out + stats
    tm = 512
    while tm > 128 and (working_set(tm) > vmem_budget
                        or -(-m // tm) < min_grid):
        tm //= 2
    # TODO(synk): for very large K*Cout (weight block alone over budget) add a
    # K-tiling grid axis with a VMEM f32 accumulator (pl.when init/finalize).
    return tm


# ------------------------------ layer wrapper ------------------------------- #

def _conv_bn_relu_layer(y_nhwc, w_oihw, bias, gamma, beta, *,
                        eps=1e-5, matmul_dtype=jnp.float32):
    """One Conv3x3(+bias) -> BatchNorm(train) -> ReLU layer, NHWC in/out."""
    N, H, W, Cin = y_nhwc.shape
    Cout = w_oihw.shape[0]
    M = N * H * W
    K = 9 * Cin
    Cpad = _round_up(Cout, 128)   # lane-dense output / MXU N dimension
    Kpad = _round_up(K, 128)      # lane-dense A / contraction dimension

    # ---- im2col (XLA glue: pad + 9 shifted slices + concat) ----
    # TODO(synk): move the 3x3 halo gather in-kernel (halo DMA of row tiles +
    # 9 shifted jnp.dot into a VMEM accumulator) to avoid materializing the
    # 9x-expanded A matrix in HBM for large layer shapes.
    xp = jnp.pad(y_nhwc, ((0, 0), (1, 1), (1, 1), (0, 0)))
    cols = [xp[:, dy:dy + H, dx:dx + W, :]
            for dy in range(3) for dx in range(3)]
    a = jnp.concatenate(cols, axis=-1).reshape(M, K)

    in_itemsize = jnp.dtype(matmul_dtype).itemsize
    tm = _choose_tile_m(M, Kpad, Cpad, in_itemsize)
    Mpad = _round_up(M, tm)
    num_tiles = Mpad // tm

    a = jnp.pad(a, ((0, Mpad - M), (0, Kpad - K))).astype(matmul_dtype)
    w2d = jnp.transpose(w_oihw, (2, 3, 1, 0)).reshape(K, Cout)      # OIHW->(K,Cout)
    w2d = jnp.pad(w2d, ((0, Kpad - K), (0, Cpad - Cout))).astype(matmul_dtype)
    b2d = jnp.pad(bias.reshape(1, Cout),
                  ((0, 0), (0, Cpad - Cout))).astype(jnp.float32)

    # ---- kernel 1: conv matmul + bias, fused per-tile BN statistics ----
    cost1 = pl.CostEstimate(
        flops=2 * Mpad * Kpad * Cpad,
        transcendentals=0,
        bytes_accessed=(Mpad * Kpad + Kpad * Cpad) * in_itemsize
                       + (Mpad * Cpad + 2 * num_tiles * Cpad + Cpad) * 4)
    conv, tsum, tssq = pl.pallas_call(
        functools.partial(_conv_bias_stats_kernel, m_real=M),
        out_shape=(jax.ShapeDtypeStruct((Mpad, Cpad), jnp.float32),
                   jax.ShapeDtypeStruct((num_tiles, 1, Cpad), jnp.float32),
                   jax.ShapeDtypeStruct((num_tiles, 1, Cpad), jnp.float32)),
        grid=(num_tiles,),
        in_specs=[
            pl.BlockSpec((tm, Kpad), lambda i: (i, 0)),
            pl.BlockSpec((Kpad, Cpad), lambda i: (0, 0)),
            pl.BlockSpec((1, Cpad), lambda i: (0, 0)),
        ],
        out_specs=(
            pl.BlockSpec((tm, Cpad), lambda i: (i, 0)),
            pl.BlockSpec((1, 1, Cpad), lambda i: (i, 0, 0)),
            pl.BlockSpec((1, 1, Cpad), lambda i: (i, 0, 0)),
        ),
        compiler_params=pltpu.CompilerParams(
            dimension_semantics=("parallel",)),
        cost_estimate=cost1,
    )(a, w2d, b2d)

    # ---- BN statistics finalize (tiny: (num_tiles, Cpad) -> (Cpad,)) ----
    s1 = jnp.sum(tsum[:, 0, :], axis=0)
    s2 = jnp.sum(tssq[:, 0, :], axis=0)
    mean = s1 / M
    var = s2 / M - mean * mean                       # biased variance (PyTorch)
    gamma_p = jnp.pad(gamma, (0, Cpad - Cout))       # zero gamma/beta padding
    beta_p = jnp.pad(beta, (0, Cpad - Cout))         # keeps padded channels 0
    scale = gamma_p * jax.lax.rsqrt(var + eps)
    shift = beta_p - mean * scale
    # TODO(synk): running_mean / running_var bookkeeping (a training-only side
    # effect, does not affect the forward output) is not modeled.

    # ---- kernel 2: y * scale + shift, ReLU — single lane-dense pass ----
    cost2 = pl.CostEstimate(flops=3 * Mpad * Cpad, transcendentals=0,
                            bytes_accessed=2 * Mpad * Cpad * 4 + 2 * Cpad * 4)
    out = pl.pallas_call(
        _bn_relu_kernel,
        out_shape=jax.ShapeDtypeStruct((Mpad, Cpad), jnp.float32),
        grid=(num_tiles,),
        in_specs=[
            pl.BlockSpec((tm, Cpad), lambda i: (i, 0)),
            pl.BlockSpec((1, Cpad), lambda i: (0, 0)),
            pl.BlockSpec((1, Cpad), lambda i: (0, 0)),
        ],
        out_specs=pl.BlockSpec((tm, Cpad), lambda i: (i, 0)),
        compiler_params=pltpu.CompilerParams(
            dimension_semantics=("parallel",)),
        cost_estimate=cost2,
    )(conv, scale.reshape(1, Cpad), shift.reshape(1, Cpad))

    return out[:M, :Cout].reshape(N, H, W, Cout)


# --------------------------------- forward --------------------------------- #

def init_params(key, in_ch, out_ch):
    ks = jax.random.split(key, 8)
    p = {}
    chans = [(in_ch, out_ch), (out_ch, out_ch)]
    for li, (ci, co) in enumerate(chans, start=1):
        p[f"w{li}"] = 0.1 * jax.random.normal(ks[4 * (li - 1) + 0],
                                              (co, ci, 3, 3), jnp.float32)
        p[f"b{li}"] = 0.1 * jax.random.normal(ks[4 * (li - 1) + 1],
                                              (co,), jnp.float32)
        p[f"gamma{li}"] = 1.0 + 0.1 * jax.random.normal(ks[4 * (li - 1) + 2],
                                                        (co,), jnp.float32)
        p[f"beta{li}"] = 0.1 * jax.random.normal(ks[4 * (li - 1) + 3],
                                                 (co,), jnp.float32)
    return p


@functools.partial(jax.jit, static_argnames=("matmul_dtype",))
def conv_block_forward(x_nchw, params, matmul_dtype=jnp.float32):
    """Forward pass equivalent to the PyTorch conv_block (training-mode BN).

    matmul_dtype=jnp.bfloat16 halves HBM traffic of the im2col matrix and hits
    the bf16-native MXU path on v6e/v7x (accumulation and BN stay f32); kept at
    f32 here to match PyTorch f32 semantics within 1e-4.
    """
    x = jnp.transpose(x_nchw, (0, 2, 3, 1)).astype(jnp.float32)  # NCHW -> NHWC
    y = x
    for li in (1, 2):
        y = _conv_bn_relu_layer(
            y, params[f"w{li}"], params[f"b{li}"],
            params[f"gamma{li}"], params[f"beta{li}"],
            matmul_dtype=matmul_dtype)
    return jnp.transpose(y, (0, 3, 1, 2))                        # NHWC -> NCHW


# ------------------------- pure-JAX reference ------------------------------- #

def conv_block_reference(x_nchw, params):
    eps = 1e-5
    y = x_nchw.astype(jnp.float32)
    for li in (1, 2):
        w = params[f"w{li}"]
        b = params[f"b{li}"]
        y = jax.lax.conv_general_dilated(
            y, w, window_strides=(1, 1), padding=((1, 1), (1, 1)),
            dimension_numbers=("NCHW", "OIHW", "NCHW"))
        y = y + b[None, :, None, None]
        mean = jnp.mean(y, axis=(0, 2, 3), keepdims=True)
        var = jnp.mean((y - mean) ** 2, axis=(0, 2, 3), keepdims=True)
        y = (y - mean) / jnp.sqrt(var + eps)
        y = y * params[f"gamma{li}"][None, :, None, None] \
              + params[f"beta{li}"][None, :, None, None]
        y = jnp.maximum(y, 0.0)
    return y


# --------------------------------- main ------------------------------------ #

if __name__ == "__main__":
    key = jax.random.PRNGKey(0)
    k_x, k_p = jax.random.split(key)

    N, in_ch, out_ch, H, W = 2, 4, 8, 16, 16
    x = jax.random.normal(k_x, (N, in_ch, H, W), jnp.float32)
    params = init_params(k_p, in_ch, out_ch)

    out = conv_block_forward(x, params)
    out = jax.block_until_ready(out)

    ref = jax.block_until_ready(conv_block_reference(x, params))
    assert out.shape == (N, out_ch, H, W)
    assert jnp.allclose(out, ref, atol=1e-4, rtol=1e-4), \
        f"max abs err = {jnp.max(jnp.abs(out - ref))}"

    print("KERNEL_OK")
</pallas_src>

<mosaic_0001>
module attributes {stable_mosaic.version = 11 : i64} {
  func.func @_conv_bias_stats_kernel(%arg0: i32, %arg1: memref<128x128xf32, #tpu.memory_space<vmem>>, %arg2: memref<128x128xf32, #tpu.memory_space<vmem>>, %arg3: memref<1x128xf32, #tpu.memory_space<vmem>>, %arg4: memref<128x128xf32, #tpu.memory_space<vmem>>, %arg5: memref<1x1x128xf32, #tpu.memory_space<vmem>>, %arg6: memref<1x1x128xf32, #tpu.memory_space<vmem>>) attributes {dimension_semantics = [#tpu.dimension_semantics<parallel>], iteration_bounds = array<i64: 4>, scalar_prefetch = 0 : i64, scratch_operands = 0 : i64, tpu.core_type = #tpu.core_type<tc>, window_params = [{transform_indices = @transform_0, window_bounds = array<i64: 128, 128>}, {pipeline_mode = #tpu.pipeline_mode<synchronous>, transform_indices = @transform_1, window_bounds = array<i64: 128, 128>}, {pipeline_mode = #tpu.pipeline_mode<synchronous>, transform_indices = @transform_2, window_bounds = array<i64: 1, 128>}, {transform_indices = @transform_3, window_bounds = array<i64: 128, 128>}, {transform_indices = @transform_4, window_bounds = array<i64: 1, 1, 128>}, {transform_indices = @transform_5, window_bounds = array<i64: 1, 1, 128>}]} {
    %c0 = arith.constant 0 : index
    %c0_0 = arith.constant 0 : index
    %0 = vector.load %arg1[%c0, %c0_0] : memref<128x128xf32, #tpu.memory_space<vmem>>, vector<128x128xf32>
    %c0_1 = arith.constant 0 : index
    %c0_2 = arith.constant 0 : index
    %1 = vector.load %arg2[%c0_1, %c0_2] : memref<128x128xf32, #tpu.memory_space<vmem>>, vector<128x128xf32>
    %cst = arith.constant dense<0.000000e+00> : vector<128x128xf32>
    %2 = tpu.matmul %0, %1, %cst {dimension_numbers = #tpu.dot_dimension_numbers<[1], [0], [0], [1], [0, 0, 1, 1], [], []>} : vector<128x128xf32>, vector<128x128xf32>, vector<128x128xf32> -> vector<128x128xf32>
    %c0_3 = arith.constant 0 : index
    %c0_4 = arith.constant 0 : index
    %3 = vector.load %arg3[%c0_3, %c0_4] : memref<1x128xf32, #tpu.memory_space<vmem>>, vector<1x128xf32>
    %4 = vector.broadcast %3 : vector<1x128xf32> to vector<128x128xf32>
    %5 = arith.addf %2, %4 : vector<128x128xf32>
    %c0_5 = arith.constant 0 : index
    %c0_6 = arith.constant 0 : index
    %6 = vector.load %arg4[%c0_5, %c0_6] : memref<128x128xf32, #tpu.memory_space<vmem>>, vector<128x128xf32>
    tpu.vector_store %arg4[%c0_5, %c0_6], %5 {strides = array<i32>} : memref<128x128xf32, #tpu.memory_space<vmem>>, vector<128x128xf32>,
    %cst_7 = arith.constant dense<0.000000e+00> : vector<128xf32>
    %7 = vector.multi_reduction <add>, %5, %cst_7 [0] : vector<128x128xf32> to vector<128xf32>
    %8 = vector.shape_cast %7 : vector<128xf32> to vector<1x1x128xf32>
    %c0_8 = arith.constant 0 : index
    %c0_9 = arith.constant 0 : index
    %c0_10 = arith.constant 0 : index
    %9 = vector.load %arg5[%c0_8, %c0_9, %c0_10] : memref<1x1x128xf32, #tpu.memory_space<vmem>>, vector<1x1x128xf32>
    tpu.vector_store %arg5[%c0_8, %c0_9, %c0_10], %8 {strides = array<i32>} : memref<1x1x128xf32, #tpu.memory_space<vmem>>, vector<1x1x128xf32>,
    %10 = arith.mulf %5, %5 : vector<128x128xf32>
    %cst_11 = arith.constant dense<0.000000e+00> : vector<128xf32>
    %11 = vector.multi_reduction <add>, %10, %cst_11 [0] : vector<128x128xf32> to vector<128xf32>
    %12 = vector.shape_cast %11 : vector<128xf32> to vector<1x1x128xf32>
    %c0_12 = arith.constant 0 : index
    %c0_13 = arith.constant 0 : index
    %c0_14 = arith.constant 0 : index
    %13 = vector.load %arg6[%c0_12, %c0_13, %c0_14] : memref<1x1x128xf32, #tpu.memory_space<vmem>>, vector<1x1x128xf32>
    tpu.vector_store %arg6[%c0_12, %c0_13, %c0_14], %12 {strides = array<i32>} : memref<1x1x128xf32, #tpu.memory_space<vmem>>, vector<1x1x128xf32>,
    return
  }
  func.func @transform_0(%arg0: i32) -> (i32, i32) {
    %c0_i32 = arith.constant 0 : i32
    %c0_i32_0 = arith.constant 0 : i32
    return %arg0, %c0_i32 : i32, i32
  }
  func.func @transform_1(%arg0: i32) -> (i32, i32) {
    %c0_i32 = arith.constant 0 : i32
    %c0_i32_0 = arith.constant 0 : i32
    %c0_i32_1 = arith.constant 0 : i32
    return %c0_i32, %c0_i32_0 : i32, i32
  }
  func.func @transform_2(%arg0: i32) -> (i32, i32) {
    %c0_i32 = arith.constant 0 : i32
    %c0_i32_0 = arith.constant 0 : i32
    %c0_i32_1 = arith.constant 0 : i32
    return %c0_i32, %c0_i32_0 : i32, i32
  }
  func.func @transform_3(%arg0: i32) -> (i32, i32) {
    %c0_i32 = arith.constant 0 : i32
    %c0_i32_0 = arith.constant 0 : i32
    return %arg0, %c0_i32 : i32, i32
  }
  func.func @transform_4(%arg0: i32) -> (i32, i32, i32) {
    %c0_i32 = arith.constant 0 : i32
    %c0_i32_0 = arith.constant 0 : i32
    %c0_i32_1 = arith.constant 0 : i32
    return %arg0, %c0_i32, %c0_i32_0 : i32, i32, i32
  }
  func.func @transform_5(%arg0: i32) -> (i32, i32, i32) {
    %c0_i32 = arith.constant 0 : i32
    %c0_i32_0 = arith.constant 0 : i32
    %c0_i32_1 = arith.constant 0 : i32
    return %arg0, %c0_i32, %c0_i32_0 : i32, i32, i32
  }
}

module attributes {stable_mosaic.version = 11 : i64} {
  func.func @_bn_relu_kernel(%arg0: i32, %arg1: memref<128x128xf32, #tpu.memory_space<vmem>>, %arg2: memref<1x128xf32, #tpu.memory_space<vmem>>, %arg3: memref<1x128xf32, #tpu.memory_space<vmem>>, %arg4: memref<128x128xf32, #tpu.memory_space<vmem>>) attributes {dimension_semantics = [#tpu.dimension_semantics<parallel>], iteration_bounds = array<i64: 4>, scalar_prefetch = 0 : i64, scratch_operands = 0 : i64, tpu.core_type = #tpu.core_type<tc>, window_params = [{transform_indices = @transform_0, window_bounds = array<i64: 128, 128>}, {pipeline_mode = #tpu.pipeline_mode<synchronous>, transform_indices = @transform_1, window_bounds = array<i64: 1, 128>}, {pipeline_mode = #tpu.pipeline_mode<synchronous>, transform_indices = @transform_2, window_bounds = array<i64: 1, 128>}, {transform_indices = @transform_3, window_bounds = array<i64: 128, 128>}]} {
    %c0 = arith.constant 0 : index
    %c0_0 = arith.constant 0 : index
    %0 = vector.load %arg1[%c0, %c0_0] : memref<128x128xf32, #tpu.memory_space<vmem>>, vector<128x128xf32>
    %c0_1 = arith.constant 0 : index
    %c0_2 = arith.constant 0 : index
    %1 = vector.load %arg2[%c0_1, %c0_2] : memref<1x128xf32, #tpu.memory_space<vmem>>, vector<1x128xf32>
    %2 = vector.broadcast %1 : vector<1x128xf32> to vector<128x128xf32>
    %3 = arith.mulf %0, %2 : vector<128x128xf32>
    %c0_3 = arith.constant 0 : index
    %c0_4 = arith.constant 0 : index
    %4 = vector.load %arg3[%c0_3, %c0_4] : memref<1x128xf32, #tpu.memory_space<vmem>>, vector<1x128xf32>
    %5 = vector.broadcast %4 : vector<1x128xf32> to vector<128x128xf32>
    %6 = arith.addf %3, %5 : vector<128x128xf32>
    %cst = arith.constant 0.000000e+00 : f32
    %7 = vector.broadcast %cst : f32 to vector<128x128xf32>
    %8 = arith.maximumf %6, %7 : vector<128x128xf32>
    %c0_5 = arith.constant 0 : index
    %c0_6 = arith.constant 0 : index
    %9 = vector.load %arg4[%c0_5, %c0_6] : memref<128x128xf32, #tpu.memory_space<vmem>>, vector<128x128xf32>
    tpu.vector_store %arg4[%c0_5, %c0_6], %8 {strides = array<i32>} : memref<128x128xf32, #tpu.memory_space<vmem>>, vector<128x128xf32>,
    return
  }
  func.func @transform_0(%arg0: i32) -> (i32, i32) {
    %c0_i32 = arith.constant 0 : i32
    %c0_i32_0 = arith.constant 0 : i32
    return %arg0, %c0_i32 : i32, i32
  }
  func.func @transform_1(%arg0: i32) -> (i32, i32) {
    %c0_i32 = arith.constant 0 : i32
    %c0_i32_0 = arith.constant 0 : i32
    %c0_i32_1 = arith.constant 0 : i32
    return %c0_i32, %c0_i32_0 : i32, i32
  }
  func.func @transform_2(%arg0: i32) -> (i32, i32) {
    %c0_i32 = arith.constant 0 : i32
    %c0_i32_0 = arith.constant 0 : i32
    %c0_i32_1 = arith.constant 0 : i32
    return %c0_i32, %c0_i32_0 : i32, i32
  }
  func.func @transform_3(%arg0: i32) -> (i32, i32) {
    %c0_i32 = arith.constant 0 : i32
    %c0_i32_0 = arith.constant 0 : i32
    return %arg0, %c0_i32 : i32, i32
  }
}

</mosaic_0001>

<bundles_post_ra>
// kernel: conv_block_forward.5
= control target key start
LH: loop header
LB: loop body
LE: loop exit
PB: predicated region body
PF: predicated region fallthrough
CT: control target
= control target key end

     0   :  { %s373_s12 = smov 0   ;;  %s468_s0 = inlined_call_operand.vmem [shape: f32[512,128], index: 0, kind: input, shape index: {}]   ;;  %s469_s1 = inlined_call_operand.vmem [shape: f32[1,128], index: 1, kind: input, shape index: {}]   ;;  %s470_s2 = inlined_call_operand.vmem [shape: f32[1,128], index: 2, kind: input, shape index: {}]   ;;  %s471_s3 = inlined_call_operand.vmem [shape: f32[512,128], index: 3, kind: output, shape index: {}]  }
   0x1 LB: > { %s324_s13 = sadd.s32 4294967295, %s351_s12   ;;  %p328_p0 = scmp.ge.s32.totalorder %s351_s12, 1  ;;  %s351_s12 = sphi %s373_s12, %s13_s12  }
   0x2   : > { %p138_p1 = scmp.lt.s32.totalorder %s351_s12, 5 }
   0x4   : > { %p139_p2 = pnand %p328_p0, %p138_p1 }
   0x5   : > { %s329_s14 = sshll.u32 (!%p139_p2), %s324_s13, 4 }
   0x6   : > { %142 = sbr.rel (%p139_p2) target bundleno = 32 (0x20), region = 32  ;;  %p163_p3 = scmp.lt.s32.totalorder (!%p139_p2), %s329_s14, 63 }
   0xb   : > { %s473_s14 = smov (!%p163_p3, %s329_s14), 63  ;;  %v384_v0 = vld [vmem:[%s469_s1] ss:$0 sm:$0xff] }
   0xc   : > { %s330_s15 = sshll.u32 %s473_s14, 3  ;;  %v394_v1 = vld [vmem:[%s470_s2] ss:$0 sm:$0xff] }
   0xd   : > { %s389_s20 = scalar_lea.vmem %s468_s0, %s330_s15  ;;  %s417_s25 = scalar_lea.vmem %s471_s3, %s330_s15 }
   0xe   : > { %v174_v2 = vld [vmem:[%s389_s20] sm:$0xff]  ;;  %v175_v3 = vld [vmem:[%s389_s20 + $0x8] sm:$0xff]  ;;  %v176_v4 = vld [vmem:[%s389_s20 + $0x10] sm:$0xff] }
   0xf   : > { %v197_v5 = vmul.f32 %v384_v0, %v174_v2  ;;  %v198_v6 = vmul.f32 %v384_v0, %v175_v3  ;;  %v199_v7 = vmul.f32 %v384_v0, %v176_v4  ;;  %v177_v8 = vld [vmem:[%s389_s20 + $0x18] sm:$0xff]  ;;  %v178_v9 = vld [vmem:[%s389_s20 + $0x20] sm:$0xff]  ;;  %v179_v10 = vld [vmem:[%s389_s20 + $0x28] sm:$0xff] }
  0x10   : > { %v200_v11 = vmul.f32 %v384_v0, %v177_v8  ;;  %v201_v12 = vmul.f32 %v384_v0, %v178_v9  ;;  %v202_v13 = vmul.f32 %v384_v0, %v179_v10  ;;  %v180_v14 = vld [vmem:[%s389_s20 + $0x30] sm:$0xff]  ;;  %v181_v15 = vld [vmem:[%s389_s20 + $0x38] sm:$0xff]  ;;  %v182_v24 = vld [vmem:[%s389_s20 + $0x40] sm:$0xff] }
  0x11   : > { %v220_v16 = vadd.f32 %v394_v1, %v197_v5  ;;  %v221_v17 = vadd.f32 %v394_v1, %v198_v6  ;;  %v222_v18 = vadd.f32 %v394_v1, %v199_v7  ;;  %v203_v19 = vmul.f32 %v384_v0, %v180_v14  ;;  %v183_v25 = vld [vmem:[%s389_s20 + $0x48] sm:$0xff]  ;;  %v184_v26 = vld [vmem:[%s389_s20 + $0x50] sm:$0xff]  ;;  %v185_v31 = vld [vmem:[%s389_s20 + $0x58] sm:$0xff] }
  0x12   : > { %v223_v20 = vadd.f32 %v394_v1, %v200_v11  ;;  %v224_v21 = vadd.f32 %v394_v1, %v201_v12  ;;  %v225_v22 = vadd.f32 %v394_v1, %v202_v13  ;;  %v204_v23 = vmul.f32 %v384_v0, %v181_v15  ;;  %v186_v32 = vld [vmem:[%s389_s20 + $0x60] sm:$0xff]  ;;  %v187_v33 = vld [vmem:[%s389_s20 + $0x68] sm:$0xff]  ;;  %v188_v38 = vld [vmem:[%s389_s20 + $0x70] sm:$0xff] }
  0x13   : > { %v236_v27 = vmax.f32 %v220_v16, 0.0  ;;  %v237_v28 = vmax.f32 %v221_v17, 0.0  ;;  %v238_v29 = vmax.f32 %v222_v18, 0.0  ;;  %v226_v30 = vadd.f32 %v394_v1, %v203_v19  ;;  %v189_v43 = vld [vmem:[%s389_s20 + $0x78] sm:$0xff] }
  0x14   : > { %v239_v34 = vmax.f32 %v223_v20, 0.0  ;;  %v240_v35 = vmax.f32 %v224_v21, 0.0  ;;  %v241_v36 = vmax.f32 %v225_v22, 0.0  ;;  %v227_v37 = vadd.f32 %v394_v1, %v204_v23 }
  0x15   : > { %252 = vst [vmem:[%s417_s25] sm:$0xff] %v236_v27  ;;  %253 = vst [vmem:[%s417_s25 + $0x8] sm:$0xff] %v237_v28  ;;  %v242_v39 = vmax.f32 %v226_v30, 0.0  ;;  %v205_v40 = vmul.f32 %v384_v0, %v182_v24  ;;  %v206_v41 = vmul.f32 %v384_v0, %v183_v25  ;;  %v207_v42 = vmul.f32 %v384_v0, %v184_v26 }
  0x16   : > { %254 = vst [vmem:[%s417_s25 + $0x10] sm:$0xff] %v238_v29  ;;  %255 = vst [vmem:[%s417_s25 + $0x18] sm:$0xff] %v239_v34  ;;  %v243_v44 = vmax.f32 %v227_v37, 0.0  ;;  %v208_v45 = vmul.f32 %v384_v0, %v185_v31  ;;  %v209_v46 = vmul.f32 %v384_v0, %v186_v32  ;;  %v210_v47 = vmul.f32 %v384_v0, %v187_v33 }
  0x17   : > { %256 = vst [vmem:[%s417_s25 + $0x20] sm:$0xff] %v240_v35  ;;  %257 = vst [vmem:[%s417_s25 + $0x28] sm:$0xff] %v241_v36  ;;  %v228_v48 = vadd.f32 %v394_v1, %v205_v40  ;;  %v229_v49 = vadd.f32 %v394_v1, %v206_v41  ;;  %v230_v50 = vadd.f32 %v394_v1, %v207_v42 }
  0x18   : > { %258 = vst [vmem:[%s417_s25 + $0x30] sm:$0xff] %v242_v39  ;;  %v211_v51 = vmul.f32 %v384_v0, %v188_v38  ;;  %259 = vst [vmem:[%s417_s25 + $0x38] sm:$0xff] %v243_v44  ;;  %v231_v52 = vadd.f32 %v394_v1, %v208_v45  ;;  %v232_v53 = vadd.f32 %v394_v1, %v209_v46 }
  0x19   : > { %v233_v54 = vadd.f32 %v394_v1, %v210_v47  ;;  %v212_v55 = vmul.f32 %v384_v0, %v189_v43  ;;  %v244_v56 = vmax.f32 %v228_v48, 0.0  ;;  %v245_v57 = vmax.f32 %v229_v49, 0.0 }
  0x1a   : > { %v246_v58 = vmax.f32 %v230_v50, 0.0  ;;  %v234_v59 = vadd.f32 %v394_v1, %v211_v51  ;;  %v247_v60 = vmax.f32 %v231_v52, 0.0  ;;  %v248_v61 = vmax.f32 %v232_v53, 0.0 }
  0x1b   : > { %v249_v62 = vmax.f32 %v233_v54, 0.0  ;;  %v235_v63 = vadd.f32 %v394_v1, %v212_v55  ;;  %260 = vst [vmem:[%s417_s25 + $0x40] sm:$0xff] %v244_v56  ;;  %261 = vst [vmem:[%s417_s25 + $0x48] sm:$0xff] %v245_v57 }
  0x1c   : > { %262 = vst [vmem:[%s417_s25 + $0x50] sm:$0xff] %v246_v58  ;;  %v250_v2 = vmax.f32 %v234_v59, 0.0  ;;  %263 = vst [vmem:[%s417_s25 + $0x58] sm:$0xff] %v247_v60 }
  0x1d   : > { %264 = vst [vmem:[%s417_s25 + $0x60] sm:$0xff] %v248_v61  ;;  %265 = vst [vmem:[%s417_s25 + $0x68] sm:$0xff] %v249_v62  ;;  %v251_v0 = vmax.f32 %v235_v63, 0.0 }
  0x1e   : > { %266 = vst [vmem:[%s417_s25 + $0x70] sm:$0xff] %v250_v2 }
  0x1f   : > { %267 = vst [vmem:[%s417_s25 + $0x78] sm:$0xff] %v251_v0 }
  0x20 PF: > { %s13_s12 = sadd.s32 1, %s351_s12  }
  0x21   : > { %p10_p4 = scmp.ge.s32.totalorder %s13_s12, 6  }
  0x23   :  { %12 = sbr.rel (!%p10_p4) target bundleno = 1 (0x1), region = 62 }

// kernel: conv_block_forward.4
= control target key start
LH: loop header
LB: loop body
LE: loop exit
PB: predicated region body
PF: predicated region fallthrough
CT: control target
= control target key end

     0   :  { %s789_s18 = smov 0   ;;  %s935_s0 = inlined_call_operand.vmem [shape: f32[512,128], index: 0, kind: input, shape index: {}]   ;;  %s936_s1 = inlined_call_operand.vmem [shape: f32[128,128], index: 1, kind: input, shape index: {}]   ;;  %s937_s2 = inlined_call_operand.vmem [shape: f32[1,128], index: 2, kind: input, shape index: {}]   ;;  %s938_s3 = inlined_call_operand.vmem [shape: f32[512,128], index: 3, kind: output, shape index: {0}]   ;;  %s939_s4 = inlined_call_operand.vmem [shape: f32[4,1,128], index: 4, kind: output, shape index: {1}]   ;;  %s940_s5 = inlined_call_operand.vmem [shape: f32[4,1,128], index: 5, kind: output, shape index: {2}]  }
   0x1 LB: > { %s795_s19 = sadd.s32 4294967295, %s757_s18   ;;  %p615_p0 = scmp.ge.s32.totalorder %s757_s18, 1  ;;  %s757_s18 = sphi %s789_s18, %s16_s18  }
   0x2   : > { %p193_p1 = scmp.lt.s32.totalorder %s757_s18, 5 }
   0x4   : > { %p194_p2 = pnand %p615_p0, %p193_p1 }
   0x5   : > { %s616_s24 = sshll.u32 (!%p194_p2), %s795_s19, 4  ;;  %p239_p4 = scmp.lt.s32.totalorder (!%p194_p2), %s795_s19, 3 }
   0x6   : > { %197 = sbr.rel (%p194_p2) target bundleno = 288 (0x120), region = 32  ;;  %p228_p3 = scmp.lt.s32.totalorder (!%p194_p2), %s616_s24, 63 }
   0xb   : > { %v276_v0 = vld [vmem:[%s936_s1 + $0x78] sm:$0xff]  ;;  %v275_v1 = vld [vmem:[%s936_s1 + $0x70] sm:$0xff]  ;;  %v274_v2 = vld [vmem:[%s936_s1 + $0x68] sm:$0xff]  ;;  %s942_s24 = smov (!%p228_p3, %s616_s24), 63  ;;  %s944_s19 = smov (!%p239_p4, %s795_s19), 3 }
   0xc   : > { %655 = vmatprep.subr.mxu0 %v276_v0  ;;  %711 = vmatprep.subr.mxu1 %v276_v0  ;;  %v273_v3 = vld [vmem:[%s936_s1 + $0x60] sm:$0xff]  ;;  %v272_v4 = vld [vmem:[%s936_s1 + $0x58] sm:$0xff]  ;;  %v271_v5 = vld [vmem:[%s936_s1 + $0x50] sm:$0xff]  ;;  %s617_s10 = sshll.u32 %s942_s24, 3  ;;  %s244_s21 = scalar_lea.vmem %s940_s5, %s944_s19 }
   0xd   : > { %656 = vmatpush3.msra.mxu0 %v276_v0  ;;  %727 = vmatpush3.msra.mxu1 %v276_v0  ;;  %v270_v6 = vld [vmem:[%s936_s1 + $0x48] sm:$0xff]  ;;  %v269_v7 = vld [vmem:[%s936_s1 + $0x40] sm:$0xff]  ;;  %s832_s15 = scalar_lea.vmem %s935_s0, %s617_s10  ;;  %v268_v8 = vld [vmem:[%s936_s1 + $0x38] sm:$0xff]  ;;  %s884_s16 = scalar_lea.vmem %s938_s3, %s617_s10 }
   0xe   : > { %657 = vmatprep.subr.mxu0 %v275_v1  ;;  %712 = vmatprep.subr.mxu1 %v275_v1  ;;  %v267_v9 = vld [vmem:[%s936_s1 + $0x30] sm:$0xff]  ;;  %v245_v10 = vld [vmem:[%s832_s15] sm:$0xff]  ;;  %v266_v11 = vld [vmem:[%s936_s1 + $0x28] sm:$0xff] }
   0xf   : > { %658 = vmatpush3.msra.mxu0 %v275_v1  ;;  %728 = vmatpush3.msra.mxu1 %v275_v1  ;;  %v265_v12 = vld [vmem:[%s936_s1 + $0x20] sm:$0xff]  ;;  %v264_v13 = vld [vmem:[%s936_s1 + $0x18] sm:$0xff]  ;;  %v263_v14 = vld [vmem:[%s936_s1 + $0x10] sm:$0xff] }
  0x10   : > { %659 = vmatprep.subr.mxu0 %v274_v2  ;;  %713 = vmatprep.subr.mxu1 %v274_v2  ;;  %v262_v15 = vld [vmem:[%s936_s1 + $0x8] sm:$0xff]  ;;  %v261_v16 = vld [vmem:[%s936_s1] sm:$0xff]  ;;  %v247_v18 = vld [vmem:[%s832_s15 + $0x10] sm:$0xff] }
  0x11   : > { %660 = vmatpush3.msra.mxu0 %v274_v2  ;;  %729 = vmatpush3.msra.mxu1 %v274_v2  ;;  %v246_v17 = vld [vmem:[%s832_s15 + $0x8] sm:$0xff]  ;;  %v253_v19 = vld [vmem:[%s832_s15 + $0x40] sm:$0xff]  ;;  %v255_v21 = vld [vmem:[%s832_s15 + $0x50] sm:$0xff] }
  0x12   : > { %661 = vmatprep.subr.mxu0 %v273_v3  ;;  %714 = vmatprep.subr.mxu1 %v273_v3  ;;  %v254_v20 = vld [vmem:[%s832_s15 + $0x48] sm:$0xff]  ;;  %v248_v22 = vld [vmem:[%s832_s15 + $0x18] sm:$0xff]  ;;  %v249_v23 = vld [vmem:[%s832_s15 + $0x20] sm:$0xff] }
  0x13   : > { %662 = vmatpush3.msra.mxu0 %v273_v3  ;;  %730 = vmatpush3.msra.mxu1 %v273_v3  ;;  %v256_v24 = vld [vmem:[%s832_s15 + $0x58] sm:$0xff]  ;;  %v257_v25 = vld [vmem:[%s832_s15 + $0x60] sm:$0xff]  ;;  %v250_v26 = vld [vmem:[%s832_s15 + $0x28] sm:$0xff] }
  0x14   : > { %663 = vmatprep.subr.mxu0 %v272_v4  ;;  %715 = vmatprep.subr.mxu1 %v272_v4  ;;  %v251_v27 = vld [vmem:[%s832_s15 + $0x30] sm:$0xff]  ;;  %v258_v28 = vld [vmem:[%s832_s15 + $0x68] sm:$0xff]  ;;  %v252_v30 = vld [vmem:[%s832_s15 + $0x38] sm:$0xff] }
  0x15   : > { %664 = vmatpush3.msra.mxu0 %v272_v4  ;;  %731 = vmatpush3.msra.mxu1 %v272_v4  ;;  %v259_v29 = vld [vmem:[%s832_s15 + $0x70] sm:$0xff]  ;;  %v260_v31 = vld [vmem:[%s832_s15 + $0x78] sm:$0xff]  ;;  %v877_v32 = vld [vmem:[%s937_s2] ss:$0 sm:$0xff]  ;;  %s241_s15 = scalar_lea.vmem %s939_s4, %s944_s19 }
  0x16   : > { %665 = vmatprep.subr.mxu0 %v271_v5  ;;  %716 = vmatprep.subr.mxu1 %v271_v5 }
  0x17   : > { %666 = vmatpush3.msra.mxu0 %v271_v5  ;;  %732 = vmatpush3.msra.mxu1 %v271_v5 }
  0x18   : > { %667 = vmatprep.subr.mxu0 %v270_v6  ;;  %717 = vmatprep.subr.mxu1 %v270_v6 }
  0x19   : > { %668 = vmatpush3.msra.mxu0 %v270_v6  ;;  %733 = vmatpush3.msra.mxu1 %v270_v6 }
  0x1a   : > { %669 = vmatprep.subr.mxu0 %v269_v7  ;;  %718 = vmatprep.subr.mxu1 %v269_v7 }
  0x1b   : > { %670 = vmatpush3.msra.mxu0 %v269_v7  ;;  %734 = vmatpush3.msra.mxu1 %v269_v7 }
  0x1c   : > { %671 = vmatprep.subr.mxu0 %v268_v8  ;;  %719 = vmatprep.subr.mxu1 %v268_v8 }
  0x1d   : > { %672 = vmatpush3.msra.mxu0 %v268_v8  ;;  %735 = vmatpush3.msra.mxu1 %v268_v8 }
  0x1e   : > { %673 = vmatprep.subr.mxu0 %v267_v9  ;;  %687 = vmatprep.mubr.f32.mxu0 %v245_v10 }
  0x1f   : > { %674 = vmatpush3.msra.mxu0 %v267_v9  ;;  %720 = vmatprep.subr.mxu1 %v267_v9 }
  0x20   : > { %675 = vmatprep.subr.mxu0 %v266_v11  ;;  %736 = vmatpush3.msra.mxu1 %v267_v9 }
  0x21   : > { %676 = vmatpush3.msra.mxu0 %v266_v11  ;;  %721 = vmatprep.subr.mxu1 %v266_v11 }
  0x22   : > { %677 = vmatprep.subr.mxu0 %v265_v12  ;;  %737 = vmatpush3.msra.mxu1 %v266_v11 }
  0x23   : > { %678 = vmatpush3.msra.mxu0 %v265_v12  ;;  %722 = vmatprep.subr.mxu1 %v265_v12 }
  0x24   : > { %679 = vmatprep.subr.mxu0 %v264_v13  ;;  %738 = vmatpush3.msra.mxu1 %v265_v12 }
  0x25   : > { %680 = vmatpush3.msra.mxu0 %v264_v13  ;;  %723 = vmatprep.subr.mxu1 %v264_v13 }
  0x26   : > { %681 = vmatprep.subr.mxu0 %v263_v14  ;;  %739 = vmatpush3.msra.mxu1 %v264_v13 }
  0x27   : > { %682 = vmatpush3.msra.mxu0 %v263_v14  ;;  %724 = vmatprep.subr.mxu1 %v263_v14 }
  0x28   : > { %683 = vmatprep.subr.mxu0 %v262_v15  ;;  %740 = vmatpush3.msra.mxu1 %v263_v14 }
  0x29   : > { %684 = vmatpush3.msra.mxu0 %v262_v15  ;;  %725 = vmatprep.subr.mxu1 %v262_v15 }
  0x2a   : > { %685 = vmatprep.subr.mxu0 %v261_v16  ;;  %741 = vmatpush3.msra.mxu1 %v262_v15 }
  0x2b   : > { %686 = vmatpush3.msra.mxu0 %v261_v16  ;;  %726 = vmatprep.subr.mxu1 %v261_v16 }
  0x2c   : > { %688 = vmatmul.mubr.f32.vlgmr.msra.gmra.mxu0 %v246_v17  ;;  %742 = vmatpush3.msra.mxu1 %v261_v16 }
  0x2d   : > { %690 = vmatprep.mubr.f32.mxu0 %v247_v18  ;;  %699 = vmatprep.mubr.f32.mxu1 %v253_v19 }
  0x2e   : > { %700 = vmatmul.mubr.f32.vlgmr.msra.gmra.mxu1 %v254_v20 }
  0x2f   : > { %702 = vmatprep.mubr.f32.mxu1 %v255_v21 }
  0x30   : > { %691 = vmatmul.mubr.f32.gmra.mxu0 %v248_v22 }
  0x31   : > { %693 = vmatprep.mubr.f32.mxu0 %v249_v23 }
  0x32   : > { %703 = vmatmul.mubr.f32.gmra.mxu1 %v256_v24 }
  0x33   : > { %705 = vmatprep.mubr.f32.mxu1 %v257_v25 }
  0x34   : > { %694 = vmatmul.mubr.f32.gmra.mxu0 %v250_v26 }
  0x35   : > { %696 = vmatprep.mubr.f32.mxu0 %v251_v27 }
  0x36   : > { %706 = vmatmul.mubr.f32.gmra.mxu1 %v258_v28 }
  0x37   : > { %708 = vmatprep.mubr.f32.mxu1 %v259_v29 }
  0x38   : > { %697 = vmatmul.mubr.f32.gmra.mxu0 %v252_v30 }
  0x3a   : > { %709 = vmatmul.mubr.f32.gmra.mxu1 %v260_v31 }
  0xec   : > { %v689_v33 = vpop.f32.mrf.mxu0 }
  0xed   : > { %v356_v34 = vadd.f32 %v689_v33, %v877_v32 }
  0xee   : > { %v350_v35 = vpop.f32.mrf.mxu0  ;;  %v701_v36 = vpop.f32.mrf.mxu1 }
  0xef   : > { %430 = vst [vmem:[%s884_s16 + $0x8] sm:$0xff] %v356_v34  ;;  %v351_v37 = vadd.f32 %v877_v32, %v350_v35  ;;  %v890_v38 = vadd.f32 %v701_v36, %v877_v32  ;;  %v468_v46 = vmul.f32 %v356_v34, %v356_v34 }
  0xf0   : > { %v692_v39 = vpop.f32.mrf.mxu0  ;;  %v390_v40 = vpop.f32.mrf.mxu1 }
  0xf1   : > { %429 = vst [vmem:[%s884_s16] sm:$0xff] %v351_v37  ;;  %v467_v41 = vmul.f32 %v351_v37, %v351_v37  ;;  %v366_v42 = vadd.f32 %v692_v39, %v877_v32  ;;  %438 = vst [vmem:[%s884_s16 + $0x48] sm:$0xff] %v890_v38  ;;  %v391_v44 = vadd.f32 %v877_v32, %v390_v40 }
  0xf2   : > { %v360_v43 = vpop.f32.mrf.mxu0  ;;  %v704_v45 = vpop.f32.mrf.mxu1  ;;  %v445_v47 = vadd.f32 %v356_v34, %v351_v37  ;;  %v476_v25 = vmul.f32 %v890_v38, %v890_v38 }
  0xf3   : > { %432 = vst [vmem:[%s884_s16 + $0x18] sm:$0xff] %v366_v42  ;;  %v361_v48 = vadd.f32 %v877_v32, %v360_v43  ;;  %v406_v49 = vadd.f32 %v704_v45, %v877_v32  ;;  %437 = vst [vmem:[%s884_s16 + $0x40] sm:$0xff] %v391_v44  ;;  %v483_v52 = vadd.f32 %v468_v46, %v467_v41 }
  0xf4   : > { %v695_v50 = vpop.f32.mrf.mxu0  ;;  %v400_v51 = vpop.f32.mrf.mxu1  ;;  %v470_v59 = vmul.f32 %v366_v42, %v366_v42  ;;  %v475_v23 = vmul.f32 %v391_v44, %v391_v44 }
  0xf5   : > { %431 = vst [vmem:[%s884_s16 + $0x10] sm:$0xff] %v361_v48  ;;  %v446_v53 = vadd.f32 %v445_v47, %v361_v48  ;;  %v469_v54 = vmul.f32 %v361_v48, %v361_v48  ;;  %v376_v55 = vadd.f32 %v695_v50, %v877_v32  ;;  %440 = vst [vmem:[%s884_s16 + $0x58] sm:$0xff] %v406_v49 }
  0xf6   : > { %v370_v56 = vpop.f32.mrf.mxu0  ;;  %v401_v57 = vadd.f32 %v877_v32, %v400_v51  ;;  %v707_v58 = vpop.f32.mrf.mxu1  ;;  %v478_v31 = vmul.f32 %v406_v49, %v406_v49 }
  0xf7   : > { %v484_v60 = vadd.f32 %v483_v52, %v469_v54  ;;  %434 = vst [vmem:[%s884_s16 + $0x28] sm:$0xff] %v376_v55  ;;  %v371_v61 = vadd.f32 %v877_v32, %v370_v56  ;;  %v447_v62 = vadd.f32 %v446_v53, %v366_v42  ;;  %v416_v0 = vadd.f32 %v707_v58, %v877_v32 }
  0xf8   : > { %v698_v63 = vpop.f32.mrf.mxu0  ;;  %439 = vst [vmem:[%s884_s16 + $0x50] sm:$0xff] %v401_v57  ;;  %v410_v1 = vpop.f32.mrf.mxu1  ;;  %v472_v9 = vmul.f32 %v376_v55, %v376_v55  ;;  %v477_v29 = vmul.f32 %v401_v57, %v401_v57 }
  0xf9   : > { %433 = vst [vmem:[%s884_s16 + $0x20] sm:$0xff] %v371_v61  ;;  %v448_v2 = vadd.f32 %v447_v62, %v371_v61  ;;  %v471_v3 = vmul.f32 %v371_v61, %v371_v61  ;;  %v485_v4 = vadd.f32 %v484_v60, %v470_v59  ;;  %v386_v5 = vadd.f32 %v698_v63, %v877_v32 }
  0xfa   : > { %v380_v6 = vpop.f32.mrf.mxu0  ;;  %442 = vst [vmem:[%s884_s16 + $0x68] sm:$0xff] %v416_v0  ;;  %v411_v7 = vadd.f32 %v877_v32, %v410_v1  ;;  %v710_v8 = vpop.f32.mrf.mxu1  ;;  %v480_v37 = vmul.f32 %v416_v0, %v416_v0 }
  0xfb   : > { %v486_v10 = vadd.f32 %v485_v4, %v471_v3  ;;  %436 = vst [vmem:[%s884_s16 + $0x38] sm:$0xff] %v386_v5  ;;  %v381_v11 = vadd.f32 %v877_v32, %v380_v6  ;;  %v449_v12 = vadd.f32 %v448_v2, %v376_v55  ;;  %v426_v13 = vadd.f32 %v710_v8, %v877_v32 }
  0xfc   : > { %441 = vst [vmem:[%s884_s16 + $0x60] sm:$0xff] %v411_v7  ;;  %v420_v14 = vpop.f32.mrf.mxu1  ;;  %v474_v19 = vmul.f32 %v386_v5, %v386_v5  ;;  %v479_v35 = vmul.f32 %v411_v7, %v411_v7 }
  0xfd   : > { %435 = vst [vmem:[%s884_s16 + $0x30] sm:$0xff] %v381_v11  ;;  %v450_v15 = vadd.f32 %v449_v12, %v381_v11  ;;  %v473_v16 = vmul.f32 %v381_v11, %v381_v11  ;;  %v487_v17 = vadd.f32 %v486_v10, %v472_v9  ;;  %v421_v18 = vadd.f32 %v877_v32, %v420_v14 }
  0xfe   : > { %444 = vst [vmem:[%s884_s16 + $0x78] sm:$0xff] %v426_v13 }
  0xff   : > { %v488_v20 = vadd.f32 %v487_v17, %v473_v16  ;;  %v451_v21 = vadd.f32 %v450_v15, %v386_v5  ;;  %443 = vst [vmem:[%s884_s16 + $0x70] sm:$0xff] %v421_v18  ;;  %v481_v42 = vmul.f32 %v421_v18, %v421_v18 }
 0x101   : > { %v452_v22 = vadd.f32 %v451_v21, %v391_v44  ;;  %v489_v24 = vadd.f32 %v488_v20, %v474_v19  ;;  %v482_v44 = vmul.f32 %v426_v13, %v426_v13 }
 0x103   : > { %v490_v26 = vadd.f32 %v489_v24, %v475_v23  ;;  %v453_v27 = vadd.f32 %v452_v22, %v890_v38 }
 0x105   : > { %v454_v28 = vadd.f32 %v453_v27, %v401_v57  ;;  %v491_v30 = vadd.f32 %v490_v26, %v476_v25 }
 0x107   : > { %v492_v33 = vadd.f32 %v491_v30, %v477_v29  ;;  %v455_v32 = vadd.f32 %v454_v28, %v406_v49 }
 0x109   : > { %v456_v34 = vadd.f32 %v455_v32, %v411_v7  ;;  %v493_v36 = vadd.f32 %v492_v33, %v478_v31 }
 0x10b   : > { %v494_v39 = vadd.f32 %v493_v36, %v479_v35  ;;  %v457_v40 = vadd.f32 %v456_v34, %v416_v0 }
 0x10d   : > { %v458_v41 = vadd.f32 %v457_v40, %v421_v18  ;;  %v495_v43 = vadd.f32 %v494_v39, %v480_v37 }
 0x10f   : > { %v459_v45 = vadd.f32 %v458_v41, %v426_v13  ;;  %v496_v38 = vadd.f32 %v495_v43, %v481_v42 }
 0x111   : > { %v460_v46 = vrot.slane %v459_v45, 4  ;;  %v497_v47 = vadd.f32 %v496_v38, %v482_v44 }
 0x113   : > { %v461_v48 = vadd.f32 %v460_v46, %v459_v45  ;;  %v498_v50 = vrot.slane %v497_v47, 4 }
 0x115   : > { %v462_v51 = vrot.slane %v461_v48, 2  ;;  %v499_v49 = vadd.f32 %v498_v50, %v497_v47 }
 0x117   : > { %v463_v52 = vadd.f32 %v462_v51, %v461_v48  ;;  %v500_v53 = vrot.slane %v499_v49, 2 }
 0x119   : > { %v464_v54 = vrot.slane %v463_v52, 1  ;;  %v501_v55 = vadd.f32 %v500_v53, %v499_v49 }
 0x11b   : > { %v465_v56 = vadd.f32 %v464_v54, %v463_v52  ;;  %v502_v57 = vrot.slane %v501_v55, 1 }
 0x11d   : > { %466 = vst [vmem:[%s241_s15] sm:$0x1] %v465_v56  ;;  %v503_v58 = vadd.f32 %v502_v57, %v501_v55 }
 0x11f   : > { %504 = vst [vmem:[%s244_s21] sm:$0x1] %v503_v58 }
 0x120 PF: > { %s16_s18 = sadd.s32 1, %s757_s18  }
 0x121   : > { %p13_p5 = scmp.ge.s32.totalorder %s16_s18, 6  }
 0x123   :  { %15 = sbr.rel (!%p13_p5) target bundleno = 1 (0x1), region = 86 }

</bundles_post_ra>
